<compile_context>
chip_gen: v7x
topology: tpu7x:2x2x1
jax: 0.10.0
libtpu: 0.0.40
codegen_flags: <defaults>
</compile_context>

<pallas_src>
import functools

import jax
import jax.numpy as jnp
import numpy as np
from jax.experimental import pallas as pl
from jax.experimental.pallas import tpu as pltpu


def _round_up(v, m):
    return (v + m - 1) // m * m


def _encoder_kernel(x_ref, w_ih0_ref, w_big_ref, bias_ref, state_ref, iall_ref,
                    *, num_layers, seq_len, batch_chunk, hidden_pad):
    """Wavefront multi-layer GRU encoder for one batch chunk.

    x_ref:     (1, T*BC, D)   time-major layer-0 input, bf16
    w_ih0_ref: (D, 4*Hp)      layer-0 input weights, gate slots [r|z|n_i|-], bf16
    w_big_ref: (L*Hp, L*4*Hp) block weights: diag = w_hh_l (slots r,z,n_h),
                              sub-diag = w_ih_l fed by layer l-1 (slots r,z,n_i)
    bias_ref:  (1, L*4*Hp)    fused biases [b_ir+b_hr | b_iz+b_hz | b_in | b_hn]
    state_ref: (L, BC, Hp)    final hidden state per layer (output, f32)
    iall_ref:  (T*BC, 4*Hp)   VMEM scratch for the hoisted layer-0 input GEMM
    """
    L, T, BC, Hp = num_layers, seq_len, batch_chunk, hidden_pad
    G = 4 * Hp  # per-layer gate block: [r | z | n_input | n_hidden], Hp lanes each

    # ---- Hoisted layer-0 input GEMM over all time steps (one wide MXU op),
    #      staged in VMEM scratch and ref-sliced per wavefront step. ----------
    x2d = x_ref[0]                                                 # (T*BC, D) bf16
    iall_ref[...] = jnp.dot(x2d, w_ih0_ref[...],
                            preferred_element_type=jnp.float32)    # (T*BC, G) f32

    # Hoisted broadcast (JAX does not CSE broadcast_in_dim inside loops).
    bias_b = jnp.broadcast_to(bias_ref[...], (BC, L * G))          # f32

    def step(s, hs):
        # Wavefront: layer l processes time t = s - l.  Layer-0 time index is
        # clamped so the scratch slice stays in bounds once layer 0 is done
        # (its update is masked off then anyway).
        t0 = jnp.minimum(s, T - 1)
        row = pl.multiple_of(t0 * BC, BC)
        i_t = iall_ref[pl.ds(row, BC), :]                          # (BC, G) f32

        # ONE block matmul: every layer's hidden-side (w_hh) AND the
        # input-side (w_ih) fed by the previous layer's newest h.
        hstack = jnp.concatenate(hs, axis=1).astype(jnp.bfloat16)  # (BC, L*Hp)
        g = jnp.dot(hstack, w_big_ref[...],
                    preferred_element_type=jnp.float32) + bias_b   # (BC, L*G)

        new_hs = []
        for l in range(L):                                         # static, small
            gl = g[:, l * G:(l + 1) * G]                           # lane-aligned
            if l == 0:
                gl = gl + i_t                                      # x_t contribution
            r = jax.nn.sigmoid(gl[:, 0:Hp])
            z = jax.nn.sigmoid(gl[:, Hp:2 * Hp])
            n = jnp.tanh(gl[:, 2 * Hp:3 * Hp] + r * gl[:, 3 * Hp:4 * Hp])
            h_new = (1.0 - z) * n + z * hs[l]
            t_l = s - l
            active = jnp.logical_and(t_l >= 0, t_l < T)
            new_hs.append(jnp.where(active, h_new, hs[l]))
        return tuple(new_hs)

    h0 = tuple(jnp.zeros((BC, Hp), jnp.float32) for _ in range(L))
    hs = jax.lax.fori_loop(0, T + L - 1, step, h0, unroll=False)

    for l in range(L):
        state_ref[l] = hs[l]


@jax.jit
def encoder_forward(x, params):
    """Encoder.forward: x (B, T, D) -> final GRU state (num_layers, B, H)."""
    L = len(params)
    B, T, D = x.shape
    H = params[0][1].shape[0]                    # w_hh is (H, 3H)
    Hp = _round_up(max(H, 128), 128)             # one 128-lane slot per gate
    G = 4 * Hp                                   # [r | z | n_i | n_h] per layer

    # ---- Host-side packing (pure setup, done under jit, outside the kernel) --
    def place(dst, w, row0, col0, slots):
        # scatter gate columns of w (K, n_gates*H) into 128-lane-aligned slots
        for gidx, slot in enumerate(slots):
            dst = dst.at[row0:row0 + w.shape[0],
                         col0 + slot * Hp: col0 + slot * Hp + H].set(
                w[:, gidx * H:(gidx + 1) * H])
        return dst

    w_big = jnp.zeros((L * Hp, L * G), jnp.float32)
    bias = jnp.zeros((1, L * G), jnp.float32)
    for l, (w_ih, w_hh, b_ih, b_hh) in enumerate(params):
        # hidden-side weights (diagonal block): r,z -> slots 0,1; n -> slot 3 (n_h)
        w_big = place(w_big, w_hh, l * Hp, l * G, (0, 1, 3))
        if l > 0:
            # input-side weights fed by layer l-1's h (sub-diagonal block):
            # r,z -> slots 0,1; n -> slot 2 (n_i, kept separate from n_h).
            w_big = place(w_big, w_ih, (l - 1) * Hp, l * G, (0, 1, 2))
        # fused biases: [b_ir+b_hr | b_iz+b_hz | b_in | b_hn]
        b_cat = jnp.concatenate(
            [b_ih[:, :2 * H] + b_hh[:, :2 * H], b_ih[:, 2 * H:], b_hh[:, 2 * H:]],
            axis=1)                                               # (1, 4H)
        bias = place(bias, b_cat, 0, l * G, (0, 1, 2, 3))

    # layer-0 input weights, gates r,z,n -> slots 0,1,2 (n_h slot stays zero)
    w_ih0 = place(jnp.zeros((D, G), jnp.float32), params[0][0], 0, 0, (0, 1, 2))

    w_big = w_big.astype(jnp.bfloat16)           # MXU-native operands
    w_ih0 = w_ih0.astype(jnp.bfloat16)

    # ---- Input packing: pad batch to 8-row chunks, time-major per chunk -----
    BC = 8                                       # batch rows per grid step
    Bp = _round_up(B, BC)
    if Bp != B:
        x = jnp.pad(x, ((0, Bp - B), (0, 0), (0, 0)))
    x_tm = (x.reshape(Bp // BC, BC, T, D)
             .transpose(0, 2, 1, 3)
             .reshape(Bp // BC, T * BC, D)
             .astype(jnp.bfloat16))              # row t*BC + b inside each chunk

    kernel = functools.partial(_encoder_kernel, num_layers=L, seq_len=T,
                               batch_chunk=BC, hidden_pad=Hp)

    # vmem limit sized from the actual resident footprint (2x double-buffer
    # margin), clamped to stay within v7x's 64 MiB physical VMEM.
    resident = (2 * T * BC * D * 2 + 2 * D * G * 2 + 2 * (L * Hp) * (L * G) * 2
                + 2 * L * G * 4 + 2 * L * BC * Hp * 4 + T * BC * G * 4)
    vmem_limit = int(min(max(2 * resident, 16 * 1024 * 1024), 60 * 1024 * 1024))

    state = pl.pallas_call(
        kernel,
        out_shape=jax.ShapeDtypeStruct((L, Bp, Hp), jnp.float32),
        grid=(Bp // BC,),
        in_specs=[
            pl.BlockSpec((1, T * BC, D), lambda i: (i, 0, 0)),    # x (time-major)
            pl.BlockSpec((D, G), lambda i: (0, 0)),               # layer-0 W_ih
            pl.BlockSpec((L * Hp, L * G), lambda i: (0, 0)),      # block weights
            pl.BlockSpec((1, L * G), lambda i: (0, 0)),           # fused biases
        ],
        out_specs=pl.BlockSpec((L, BC, Hp), lambda i: (0, i, 0)),
        scratch_shapes=[pltpu.VMEM((T * BC, G), jnp.float32)],    # hoisted i_all
        compiler_params=pltpu.CompilerParams(
            dimension_semantics=("parallel",),
            vmem_limit_bytes=vmem_limit),
    )(x_tm, w_ih0, w_big, bias)

    return state[:, :B, :H]


def init_encoder_params(key, input_size, hidden_size, num_layers):
    """Deterministic init mirroring nn.GRU: U(-1/sqrt(H), 1/sqrt(H)).

    Layout: per layer (w_ih (D_in, 3H), w_hh (H, 3H), b_ih (1, 3H), b_hh (1, 3H)),
    gate order (r, z, n) — transpose of PyTorch's (3H, D) blocks.
    """
    bound = 1.0 / float(np.sqrt(hidden_size))
    params = []
    for layer in range(num_layers):
        d_in = input_size if layer == 0 else hidden_size
        key, k1, k2, k3, k4 = jax.random.split(key, 5)
        w_ih = jax.random.uniform(k1, (d_in, 3 * hidden_size), jnp.float32, -bound, bound)
        w_hh = jax.random.uniform(k2, (hidden_size, 3 * hidden_size), jnp.float32, -bound, bound)
        b_ih = jax.random.uniform(k3, (1, 3 * hidden_size), jnp.float32, -bound, bound)
        b_hh = jax.random.uniform(k4, (1, 3 * hidden_size), jnp.float32, -bound, bound)
        params.append((w_ih, w_hh, b_ih, b_hh))
    return params


def _reference_encoder(x, params):
    """Pure-JAX GRU reference (PyTorch gate equations), f32, for validation."""
    states = []
    layer_in = x
    for (w_ih, w_hh, b_ih, b_hh) in params:
        B = layer_in.shape[0]
        H = w_hh.shape[0]
        h = jnp.zeros((B, H), jnp.float32)
        outs = []
        for t in range(layer_in.shape[1]):
            xt = layer_in[:, t, :]
            gi = xt @ w_ih + b_ih                              # (B, 3H)
            gh = h @ w_hh + b_hh                               # (B, 3H)
            r = jax.nn.sigmoid(gi[:, :H] + gh[:, :H])
            z = jax.nn.sigmoid(gi[:, H:2 * H] + gh[:, H:2 * H])
            n = jnp.tanh(gi[:, 2 * H:] + r * gh[:, 2 * H:])
            h = (1.0 - z) * n + z * h
            outs.append(h)
        states.append(h)
        layer_in = jnp.stack(outs, axis=1)
    return jnp.stack(states, axis=0)


if __name__ == "__main__":
    INPUT_SIZE = 16
    HIDDEN_SIZE = 32
    NUM_LAYERS = 2
    BATCH = 4
    SEQ = 8

    key = jax.random.PRNGKey(0)
    key, kx = jax.random.split(key)
    x = jax.random.normal(kx, (BATCH, SEQ, INPUT_SIZE), jnp.float32)

    params = init_encoder_params(key, INPUT_SIZE, HIDDEN_SIZE, NUM_LAYERS)

    state = encoder_forward(x, params)
    state = jax.block_until_ready(state)

    assert state.shape == (NUM_LAYERS, BATCH, HIDDEN_SIZE)

    ref = _reference_encoder(x, params)
    # bf16 MXU operands (f32 accumulate / gate math) -> slightly looser tolerance.
    np.testing.assert_allclose(np.asarray(state), np.asarray(ref),
                               rtol=3e-2, atol=3e-2)

    print("KERNEL_OK")
</pallas_src>

<mosaic_0001>
module attributes {stable_mosaic.version = 11 : i64} {
  func.func @_encoder_kernel(%arg0: i32, %arg1: memref<1x64x16xbf16, #tpu.memory_space<vmem>>, %arg2: memref<16x512xbf16, #tpu.memory_space<vmem>>, %arg3: memref<256x1024xbf16, #tpu.memory_space<vmem>>, %arg4: memref<1x1024xf32, #tpu.memory_space<vmem>>, %arg5: memref<2x8x128xf32, #tpu.memory_space<vmem>>, %arg6: memref<64x512xf32, #tpu.memory_space<vmem>>) attributes {dimension_semantics = [#tpu.dimension_semantics<parallel>], iteration_bounds = array<i64: 1>, scalar_prefetch = 0 : i64, scratch_operands = 1 : i64, tpu.core_type = #tpu.core_type<tc>, window_params = [{transform_indices = @transform_0, window_bounds = array<i64: 1, 64, 16>}, {pipeline_mode = #tpu.pipeline_mode<synchronous>, transform_indices = @transform_1, window_bounds = array<i64: 16, 512>}, {pipeline_mode = #tpu.pipeline_mode<synchronous>, transform_indices = @transform_2, window_bounds = array<i64: 256, 1024>}, {pipeline_mode = #tpu.pipeline_mode<synchronous>, transform_indices = @transform_3, window_bounds = array<i64: 1, 1024>}, {transform_indices = @transform_4, window_bounds = array<i64: 2, 8, 128>}]} {
    %c0 = arith.constant 0 : index
    %c0_0 = arith.constant 0 : index
    %c0_1 = arith.constant 0 : index
    %0 = vector.load %arg1[%c0, %c0_0, %c0_1] : memref<1x64x16xbf16, #tpu.memory_space<vmem>>, vector<1x64x16xbf16>
    %1 = vector.shape_cast %0 : vector<1x64x16xbf16> to vector<64x16xbf16>
    %c0_2 = arith.constant 0 : index
    %c0_3 = arith.constant 0 : index
    %2 = vector.load %arg2[%c0_2, %c0_3] : memref<16x512xbf16, #tpu.memory_space<vmem>>, vector<16x512xbf16>
    %cst = arith.constant dense<0.000000e+00> : vector<64x512xf32>
    %3 = tpu.matmul %1, %2, %cst {dimension_numbers = #tpu.dot_dimension_numbers<[1], [0], [0], [1], [0, 0, 1, 1], [], []>} : vector<64x16xbf16>, vector<16x512xbf16>, vector<64x512xf32> -> vector<64x512xf32>
    %c0_4 = arith.constant 0 : index
    %c0_5 = arith.constant 0 : index
    %4 = vector.load %arg6[%c0_4, %c0_5] : memref<64x512xf32, #tpu.memory_space<vmem>>, vector<64x512xf32>
    tpu.vector_store %arg6[%c0_4, %c0_5], %3 {strides = array<i32>} : memref<64x512xf32, #tpu.memory_space<vmem>>, vector<64x512xf32>,
    %c0_6 = arith.constant 0 : index
    %c0_7 = arith.constant 0 : index
    %5 = vector.load %arg4[%c0_6, %c0_7] : memref<1x1024xf32, #tpu.memory_space<vmem>>, vector<1x1024xf32>
    %6 = vector.shape_cast %5 : vector<1x1024xf32> to vector<1x1024xf32>
    %7 = vector.broadcast %6 : vector<1x1024xf32> to vector<8x1024xf32>
    %cst_8 = arith.constant 0.000000e+00 : f32
    %8 = vector.broadcast %cst_8 : f32 to vector<8x128xf32>
    %cst_9 = arith.constant 0.000000e+00 : f32
    %9 = vector.broadcast %cst_9 : f32 to vector<8x128xf32>
    %c0_i32 = arith.constant 0 : i32
    %c9_i32 = arith.constant 9 : i32
    %10 = arith.addi %c0_i32, %c9_i32 : i32
    %c1_i32 = arith.constant 1 : i32
    %11:2 = scf.for %arg7 = %c0_i32 to %10 step %c1_i32 iter_args(%arg8 = %8, %arg9 = %9) -> (vector<8x128xf32>, vector<8x128xf32>)  : i32 {
      %c7_i32 = arith.constant 7 : i32
      %18 = arith.minsi %arg7, %c7_i32 : i32
      %c8_i32 = arith.constant 8 : i32
      %19 = arith.muli %18, %c8_i32 : i32
      %20 = tpu.assume_multiple %19, 8 : i32
      %21 = arith.index_cast %20 : i32 to index
      %c0_16 = arith.constant 0 : index
      %22 = vector.load %arg6[%21, %c0_16] : memref<64x512xf32, #tpu.memory_space<vmem>>, vector<8x512xf32>
      %23 = tpu.concatenate %arg8, %arg9 in 1 : vector<8x128xf32>, vector<8x128xf32> -> vector<8x256xf32>
      %24 = arith.truncf %23 : vector<8x256xf32> to vector<8x256xbf16>
      %c0_17 = arith.constant 0 : index
      %c0_18 = arith.constant 0 : index
      %25 = vector.load %arg3[%c0_17, %c0_18] : memref<256x1024xbf16, #tpu.memory_space<vmem>>, vector<256x1024xbf16>
      %cst_19 = arith.constant dense<0.000000e+00> : vector<8x1024xf32>
      %26 = tpu.matmul %24, %25, %cst_19 {dimension_numbers = #tpu.dot_dimension_numbers<[1], [0], [0], [1], [0, 0, 1, 1], [], []>} : vector<8x256xbf16>, vector<256x1024xbf16>, vector<8x1024xf32> -> vector<8x1024xf32>
      %27 = arith.addf %26, %7 : vector<8x1024xf32>
      %28 = vector.extract_strided_slice %27 {offsets = [0, 0], sizes = [8, 512], strides = [1, 1]} : vector<8x1024xf32> to vector<8x512xf32>
      %29 = arith.addf %28, %22 : vector<8x512xf32>
      %30 = vector.extract_strided_slice %29 {offsets = [0, 0], sizes = [8, 128], strides = [1, 1]} : vector<8x512xf32> to vector<8x128xf32>
      %31 = arith.negf %30 : vector<8x128xf32>
      %32 = math.exp %31 : vector<8x128xf32>
      %cst_20 = arith.constant 1.000000e+00 : f32
      %33 = vector.broadcast %cst_20 : f32 to vector<8x128xf32>
      %34 = arith.addf %33, %32 : vector<8x128xf32>
      %35 = arith.divf %33, %34 : vector<8x128xf32>
      %36 = vector.extract_strided_slice %29 {offsets = [0, 128], sizes = [8, 128], strides = [1, 1]} : vector<8x512xf32> to vector<8x128xf32>
      %37 = arith.negf %36 : vector<8x128xf32>
      %38 = math.exp %37 : vector<8x128xf32>
      %cst_21 = arith.constant 1.000000e+00 : f32
      %39 = vector.broadcast %cst_21 : f32 to vector<8x128xf32>
      %40 = arith.addf %39, %38 : vector<8x128xf32>
      %41 = arith.divf %39, %40 : vector<8x128xf32>
      %42 = vector.extract_strided_slice %29 {offsets = [0, 256], sizes = [8, 128], strides = [1, 1]} : vector<8x512xf32> to vector<8x128xf32>
      %43 = vector.extract_strided_slice %29 {offsets = [0, 384], sizes = [8, 128], strides = [1, 1]} : vector<8x512xf32> to vector<8x128xf32>
      %44 = arith.mulf %35, %43 : vector<8x128xf32>
      %45 = arith.addf %42, %44 : vector<8x128xf32>
      %46 = math.tanh %45 : vector<8x128xf32>
      %cst_22 = arith.constant 1.000000e+00 : f32
      %47 = vector.broadcast %cst_22 : f32 to vector<8x128xf32>
      %48 = arith.subf %47, %41 : vector<8x128xf32>
      %49 = arith.mulf %48, %46 : vector<8x128xf32>
      %50 = arith.mulf %41, %arg8 : vector<8x128xf32>
      %51 = arith.addf %49, %50 : vector<8x128xf32>
      %c0_i32_23 = arith.constant 0 : i32
      %52 = arith.subi %arg7, %c0_i32_23 : i32
      %c0_i32_24 = arith.constant 0 : i32
      %53 = arith.cmpi sge, %52, %c0_i32_24 : i32
      %c8_i32_25 = arith.constant 8 : i32
      %54 = arith.cmpi slt, %52, %c8_i32_25 : i32
      %55 = arith.andi %53, %54 : i1
      %56 = arith.select %55, %51, %arg8 : vector<8x128xf32>
      %57 = vector.extract_strided_slice %27 {offsets = [0, 512], sizes = [8, 512], strides = [1, 1]} : vector<8x1024xf32> to vector<8x512xf32>
      %58 = vector.extract_strided_slice %57 {offsets = [0, 0], sizes = [8, 128], strides = [1, 1]} : vector<8x512xf32> to vector<8x128xf32>
      %59 = arith.negf %58 : vector<8x128xf32>
      %60 = math.exp %59 : vector<8x128xf32>
      %cst_26 = arith.constant 1.000000e+00 : f32
      %61 = vector.broadcast %cst_26 : f32 to vector<8x128xf32>
      %62 = arith.addf %61, %60 : vector<8x128xf32>
      %63 = arith.divf %61, %62 : vector<8x128xf32>
      %64 = vector.extract_strided_slice %57 {offsets = [0, 128], sizes = [8, 128], strides = [1, 1]} : vector<8x512xf32> to vector<8x128xf32>
      %65 = arith.negf %64 : vector<8x128xf32>
      %66 = math.exp %65 : vector<8x128xf32>
      %cst_27 = arith.constant 1.000000e+00 : f32
      %67 = vector.broadcast %cst_27 : f32 to vector<8x128xf32>
      %68 = arith.addf %67, %66 : vector<8x128xf32>
      %69 = arith.divf %67, %68 : vector<8x128xf32>
      %70 = vector.extract_strided_slice %57 {offsets = [0, 256], sizes = [8, 128], strides = [1, 1]} : vector<8x512xf32> to vector<8x128xf32>
      %71 = vector.extract_strided_slice %57 {offsets = [0, 384], sizes = [8, 128], strides = [1, 1]} : vector<8x512xf32> to vector<8x128xf32>
      %72 = arith.mulf %63, %71 : vector<8x128xf32>
      %73 = arith.addf %70, %72 : vector<8x128xf32>
      %74 = math.tanh %73 : vector<8x128xf32>
      %cst_28 = arith.constant 1.000000e+00 : f32
      %75 = vector.broadcast %cst_28 : f32 to vector<8x128xf32>
      %76 = arith.subf %75, %69 : vector<8x128xf32>
      %77 = arith.mulf %76, %74 : vector<8x128xf32>
      %78 = arith.mulf %69, %arg9 : vector<8x128xf32>
      %79 = arith.addf %77, %78 : vector<8x128xf32>
      %c1_i32_29 = arith.constant 1 : i32
      %80 = arith.subi %arg7, %c1_i32_29 : i32
      %c0_i32_30 = arith.constant 0 : i32
      %81 = arith.cmpi sge, %80, %c0_i32_30 : i32
      %c8_i32_31 = arith.constant 8 : i32
      %82 = arith.cmpi slt, %80, %c8_i32_31 : i32
      %83 = arith.andi %81, %82 : i1
      %84 = arith.select %83, %79, %arg9 : vector<8x128xf32>
      scf.yield %56, %84 : vector<8x128xf32>, vector<8x128xf32>
    }
    %c9_i32_10 = arith.constant 9 : i32
    %c0_11 = arith.constant 0 : index
    %c0_12 = arith.constant 0 : index
    %c0_13 = arith.constant 0 : index
    %12 = vector.load %arg5[%c0_11, %c0_12, %c0_13] : memref<2x8x128xf32, #tpu.memory_space<vmem>>, vector<1x8x128xf32>
    %13 = vector.shape_cast %12 : vector<1x8x128xf32> to vector<8x128xf32>
    %14 = vector.shape_cast %11#0 : vector<8x128xf32> to vector<1x8x128xf32>
    tpu.vector_store %arg5[%c0_11, %c0_12, %c0_13], %14 {strides = array<i32>} : memref<2x8x128xf32, #tpu.memory_space<vmem>>, vector<1x8x128xf32>,
    %c1 = arith.constant 1 : index
    %c0_14 = arith.constant 0 : index
    %c0_15 = arith.constant 0 : index
    %15 = vector.load %arg5[%c1, %c0_14, %c0_15] : memref<2x8x128xf32, #tpu.memory_space<vmem>>, vector<1x8x128xf32>
    %16 = vector.shape_cast %15 : vector<1x8x128xf32> to vector<8x128xf32>
    %17 = vector.shape_cast %11#1 : vector<8x128xf32> to vector<1x8x128xf32>
    tpu.vector_store %arg5[%c1, %c0_14, %c0_15], %17 {strides = array<i32>} : memref<2x8x128xf32, #tpu.memory_space<vmem>>, vector<1x8x128xf32>,
    return
  }
  func.func @transform_0(%arg0: i32) -> (i32, i32, i32) {
    %c0_i32 = arith.constant 0 : i32
    %c0_i32_0 = arith.constant 0 : i32
    %c0_i32_1 = arith.constant 0 : i32
    return %arg0, %c0_i32, %c0_i32_0 : i32, i32, i32
  }
  func.func @transform_1(%arg0: i32) -> (i32, i32) {
    %c0_i32 = arith.constant 0 : i32
    %c0_i32_0 = arith.constant 0 : i32
    %c0_i32_1 = arith.constant 0 : i32
    return %c0_i32, %c0_i32_0 : i32, i32
  }
  func.func @transform_2(%arg0: i32) -> (i32, i32) {
    %c0_i32 = arith.constant 0 : i32
    %c0_i32_0 = arith.constant 0 : i32
    %c0_i32_1 = arith.constant 0 : i32
    return %c0_i32, %c0_i32_0 : i32, i32
  }
  func.func @transform_3(%arg0: i32) -> (i32, i32) {
    %c0_i32 = arith.constant 0 : i32
    %c0_i32_0 = arith.constant 0 : i32
    %c0_i32_1 = arith.constant 0 : i32
    return %c0_i32, %c0_i32_0 : i32, i32
  }
  func.func @transform_4(%arg0: i32) -> (i32, i32, i32) {
    %c0_i32 = arith.constant 0 : i32
    %c0_i32_0 = arith.constant 0 : i32
    %c0_i32_1 = arith.constant 0 : i32
    return %c0_i32, %arg0, %c0_i32_0 : i32, i32, i32
  }
}

</mosaic_0001>

<bundles_post_ra>
// kernel: encoder_forward.1
= control target key start
LH: loop header
LB: loop body
LE: loop exit
PB: predicated region body
PF: predicated region fallthrough
CT: control target
= control target key end

     0   :  { %v1571_v1 = vmov 0   ;;  %vm70_vm0 = vcmask 130048   ;;  %v263_v9 = vlaneseq  ;;  %v1648_v60 = vmov 0.0   ;;  %s2093_s1 = inlined_call_operand.vmem [shape: bf16[16,512], index: 1, kind: input, shape index: {}]   ;;  %s2094_s2 = inlined_call_operand.vmem [shape: bf16[256,1024], index: 2, kind: input, shape index: {}]   ;;  %s2095_s4 = inlined_call_operand.vmem [shape: f32[2,8,128], index: 4, kind: output, shape index: {}]   ;;  %s2096_s0 = inlined_call_operand.vmem [shape: bf16[1,64,16], index: 0, kind: input, shape index: {}]   ;;  %s2097_s3 = inlined_call_operand.vmem [shape: f32[1,1024], index: 3, kind: input, shape index: {}]  }
   0x1   :  { %v1517_v0 = vld [vmem:[%s2093_s1 + $0x4] ss:$16 sps:$4 sm:$0xff]   ;;  %115 = vmatprep.mubr.bf16.mxu0 %v1571_v1  ;;  %188 = vmatprep.mubr.bf16.mxu1 %v1571_v1  ;;  %v1519_v2 = vld [vmem:[%s2093_s1 + $0xc] ss:$16 sps:$4 sm:$0xff]   ;;  %v1521_v3 = vld [vmem:[%s2093_s1] ss:$16 sps:$4 sm:$0xff]  }
   0x2   :  { %83 = vmatprep.subr.bf16.mxu0 %v1517_v0  ;;  %v1522_v4 = vld [vmem:[%s2093_s1 + $0x8] ss:$16 sps:$4 sm:$0xff]   ;;  %156 = vmatprep.subr.bf16.mxu1 %v1519_v2  ;;  %v1523_v5 = vld [vmem:[%s2096_s0] sm:$0xff]   ;;  %v1525_v7 = vld [vmem:[%s2096_s0 + $0x10] sm:$0xff]   ;;  %v264_v10 = vshrl.u32 %v263_v9, 7  ;;  %v1650_v61 = vmov 0.0  }
   0x3   :  { %84 = vmatpush1.bf16.msra.mxu0 %v1521_v3  ;;  %157 = vmatpush1.bf16.msra.mxu1 %v1522_v4  ;;  %v1524_v6 = vld [vmem:[%s2096_s0 + $0x8] sm:$0xff]   ;;  %v1526_v8 = vld [vmem:[%s2096_s0 + $0x18] sm:$0xff]   ;;  %v261_v15 = vld [vmem:[%s2097_s3] sm:$0xff]  ;;  %s1652_s0 = smov 0  }
   0x4   :  { %v265_v11 = vsub.s32 0, %v264_v10  ;;  %v269_v12 = vsub.s32 1, %v264_v10  ;;  %v273_v13 = vsub.s32 2, %v264_v10  ;;  %v277_v14 = vsub.s32 3, %v264_v10 }
   0x5   :  { %v281_v16 = vsub.s32 4, %v264_v10  ;;  %v285_v17 = vsub.s32 5, %v264_v10  ;;  %v289_v18 = vsub.s32 6, %v264_v10  ;;  %v293_v19 = vsub.s32 7, %v264_v10 }
   0x6   :  { %1344 = vmatmul.mubr.msk.bf16.vlgmr.msra.gmra.mrb[0].mxu0 %vm70_vm0, %v1523_v5  ;;  %1348 = vmatmul.mubr.msk.bf16.vlgmr.msra.gmra.mrb[0].mxu1 %vm70_vm0, %v1523_v5  ;;  %v1632_v20 = vrot.slane %v261_v15, %v265_v11  ;;  %v1634_v21 = vrot.slane %v261_v15, %v269_v12  ;;  %v1636_v22 = vrot.slane %v261_v15, %v273_v13 }
   0x7   :  { %125 = vmatprep.mubr.bf16.mxu0 %v1571_v1  ;;  %198 = vmatprep.mubr.bf16.mxu1 %v1571_v1  ;;  %v1638_v23 = vrot.slane %v261_v15, %v277_v14  ;;  %v1640_v24 = vrot.slane %v261_v15, %v281_v16  ;;  %v1642_v25 = vrot.slane %v261_v15, %v285_v17 }
   0x8   :  { %v1644_v26 = vrot.slane %v261_v15, %v289_v18  ;;  %v1646_v27 = vrot.slane %v261_v15, %v293_v19 }
   0xe   :  { %1345 = vmatmul.mubr.msk.bf16.gmra.mrb[4].mxu0 %vm70_vm0, %v1524_v6  ;;  %1349 = vmatmul.mubr.msk.bf16.gmra.mrb[4].mxu1 %vm70_vm0, %v1524_v6 }
   0xf   :  { %135 = vmatprep.mubr.bf16.mxu0 %v1571_v1  ;;  %208 = vmatprep.mubr.bf16.mxu1 %v1571_v1 }
  0x16   :  { %1346 = vmatmul.mubr.msk.bf16.gmra.mrb[8].mxu0 %vm70_vm0, %v1525_v7  ;;  %1350 = vmatmul.mubr.msk.bf16.gmra.mrb[8].mxu1 %vm70_vm0, %v1525_v7 }
  0x17   :  { %145 = vmatprep.mubr.bf16.mxu0 %v1571_v1  ;;  %218 = vmatprep.mubr.bf16.mxu1 %v1571_v1 }
  0x1e   :  { %1347 = vmatmul.mubr.msk.bf16.gmra.mrb[12].mxu0 %vm70_vm0, %v1526_v8  ;;  %1351 = vmatmul.mubr.msk.bf16.gmra.mrb[12].mxu1 %vm70_vm0, %v1526_v8 }
  0xd9   :  { %v117_v28 = vpop.f32.mrb[0].mxu0  ;;  %v190_v29 = vpop.f32.mrb[0].mxu1 }
  0xda   :  { %229 = vst [vmem:[#allocation2] sm:$0xff] %v117_v28  ;;  %231 = vst [vmem:[#allocation2 + $0x10] sm:$0xff] %v190_v29  ;;  %v119_v30 = vpop.f32.mrb[1].mxu0  ;;  %v192_v31 = vpop.f32.mrb[1].mxu1 }
  0xdb   :  { %230 = vst [vmem:[#allocation2 + $0x8] sm:$0xff] %v119_v30  ;;  %232 = vst [vmem:[#allocation2 + $0x18] sm:$0xff] %v192_v31  ;;  %v121_v32 = vpop.f32.mrb[2].mxu0  ;;  %v194_v33 = vpop.f32.mrb[2].mxu1 }
  0xdc   :  { %233 = vst [vmem:[#allocation2 + $0x20] sm:$0xff] %v121_v32  ;;  %235 = vst [vmem:[#allocation2 + $0x30] sm:$0xff] %v194_v33  ;;  %v123_v34 = vpop.f32.mrb[3].mxu0  ;;  %v196_v35 = vpop.f32.mrb[3].mxu1 }
  0xdd   :  { %234 = vst [vmem:[#allocation2 + $0x28] sm:$0xff] %v123_v34  ;;  %236 = vst [vmem:[#allocation2 + $0x38] sm:$0xff] %v196_v35 }
  0xe1   :  { %v127_v36 = vpop.f32.mrb[4].mxu0  ;;  %v200_v37 = vpop.f32.mrb[4].mxu1 }
  0xe2   :  { %237 = vst [vmem:[#allocation2 + $0x40] sm:$0xff] %v127_v36  ;;  %239 = vst [vmem:[#allocation2 + $0x50] sm:$0xff] %v200_v37  ;;  %v129_v38 = vpop.f32.mrb[5].mxu0  ;;  %v202_v39 = vpop.f32.mrb[5].mxu1 }
  0xe3   :  { %238 = vst [vmem:[#allocation2 + $0x48] sm:$0xff] %v129_v38  ;;  %240 = vst [vmem:[#allocation2 + $0x58] sm:$0xff] %v202_v39  ;;  %v131_v40 = vpop.f32.mrb[6].mxu0  ;;  %v204_v41 = vpop.f32.mrb[6].mxu1 }
  0xe4   :  { %241 = vst [vmem:[#allocation2 + $0x60] sm:$0xff] %v131_v40  ;;  %243 = vst [vmem:[#allocation2 + $0x70] sm:$0xff] %v204_v41  ;;  %v133_v42 = vpop.f32.mrb[7].mxu0  ;;  %v206_v43 = vpop.f32.mrb[7].mxu1 }
  0xe5   :  { %242 = vst [vmem:[#allocation2 + $0x68] sm:$0xff] %v133_v42  ;;  %244 = vst [vmem:[#allocation2 + $0x78] sm:$0xff] %v206_v43 }
  0xe9   :  { %v137_v44 = vpop.f32.mrb[8].mxu0  ;;  %v210_v45 = vpop.f32.mrb[8].mxu1 }
  0xea   :  { %245 = vst [vmem:[#allocation2 + $0x80] sm:$0xff] %v137_v44  ;;  %247 = vst [vmem:[#allocation2 + $0x90] sm:$0xff] %v210_v45  ;;  %v139_v46 = vpop.f32.mrb[9].mxu0  ;;  %v212_v47 = vpop.f32.mrb[9].mxu1 }
  0xeb   :  { %246 = vst [vmem:[#allocation2 + $0x88] sm:$0xff] %v139_v46  ;;  %248 = vst [vmem:[#allocation2 + $0x98] sm:$0xff] %v212_v47  ;;  %v141_v48 = vpop.f32.mrb[10].mxu0  ;;  %v214_v49 = vpop.f32.mrb[10].mxu1 }
  0xec   :  { %249 = vst [vmem:[#allocation2 + $0xa0] sm:$0xff] %v141_v48  ;;  %251 = vst [vmem:[#allocation2 + $0xb0] sm:$0xff] %v214_v49  ;;  %v143_v50 = vpop.f32.mrb[11].mxu0  ;;  %v216_v51 = vpop.f32.mrb[11].mxu1 }
  0xed   :  { %250 = vst [vmem:[#allocation2 + $0xa8] sm:$0xff] %v143_v50  ;;  %252 = vst [vmem:[#allocation2 + $0xb8] sm:$0xff] %v216_v51 }
  0xf1   :  { %v147_v52 = vpop.f32.mrb[12].mxu0  ;;  %v220_v53 = vpop.f32.mrb[12].mxu1 }
  0xf2   :  { %253 = vst [vmem:[#allocation2 + $0xc0] sm:$0xff] %v147_v52  ;;  %255 = vst [vmem:[#allocation2 + $0xd0] sm:$0xff] %v220_v53  ;;  %v149_v54 = vpop.f32.mrb[13].mxu0  ;;  %v222_v55 = vpop.f32.mrb[13].mxu1 }
  0xf3   :  { %254 = vst [vmem:[#allocation2 + $0xc8] sm:$0xff] %v149_v54  ;;  %256 = vst [vmem:[#allocation2 + $0xd8] sm:$0xff] %v222_v55  ;;  %v151_v56 = vpop.f32.mrb[14].mxu0  ;;  %v224_v57 = vpop.f32.mrb[14].mxu1 }
  0xf4   :  { %257 = vst [vmem:[#allocation2 + $0xe0] sm:$0xff] %v151_v56  ;;  %259 = vst [vmem:[#allocation2 + $0xf0] sm:$0xff] %v224_v57  ;;  %v153_v58 = vpop.f32.mrb[15].mxu0  ;;  %v226_v59 = vpop.f32.mrb[15].mxu1 }
  0xf5   :  { %258 = vst [vmem:[#allocation2 + $0xe8] sm:$0xff] %v153_v58  ;;  %260 = vst [vmem:[#allocation2 + $0xf8] sm:$0xff] %v226_v59 }
  0xf6 LB: > { %v325_v62 = vld [vmem:[%s2094_s2] sm:$0xff]  ;;  %v1683_v7 = vpack.c.bf16 %v1561_v60, %v1561_v60  ;;  %v326_v9 = vld [vmem:[%s2094_s2 + $0x8] sm:$0xff]  ;;  %p311_p0 = scmp.lt.s32.totalorder %s1569_s0, 7  ;;  %p1280_p1 = scmp.ge.s32.totalorder %s1569_s0, 0  ;;  %s1569_s0 = sphi %s1652_s0, %s308_s0   ;;  %v1565_v61 = vphi %v1650_v61, %v2099_v61   ;;  %v1561_v60 = vphi %v1648_v60, %v2098_v60  }
  0xf7   : > { %v329_v63 = vld [vmem:[%s2094_s2 + $0x20] sm:$0xff]  ;;  %v330_v10 = vld [vmem:[%s2094_s2 + $0x28] sm:$0xff]  ;;  %p1281_p2 = scmp.lt.s32.totalorder %s1569_s0, 8  ;;  %s1488_s15 = sadd.s32 4294967295, %s1569_s0 }
  0xf8   : > { %v333_v0 = vld [vmem:[%s2094_s2 + $0x40] sm:$0xff]  ;;  %v1356_v1 = vcombine.high %v325_v62, %v329_v63  ;;  %v1355_v2 = vcombine.low %v325_v62, %v329_v63  ;;  %v1358_v12 = vcombine.high %v326_v9, %v330_v10  ;;  %v1357_v13 = vcombine.low %v326_v9, %v330_v10  ;;  %v334_v14 = vld [vmem:[%s2094_s2 + $0x48] sm:$0xff]  ;;  %1125 = vmatprep.mubr.bf16.mxu0 %v1683_v7  ;;  %s312_s9 = scalar_select %p311_p0, %s1569_s0, 7 }
  0xf9   : > { %v337_v3 = vld [vmem:[%s2094_s2 + $0x60] sm:$0xff]  ;;  %v338_v15 = vld [vmem:[%s2094_s2 + $0x68] sm:$0xff]  ;;  %1166 = vmatprep.mubr.bf16.mxu1 %v1683_v7  ;;  %p1282_p3 = pnand %p1281_p2, %p1280_p1  ;;  %p1308_p4 = scmp.ge.s32.totalorder %s1488_s15, 0 }
  0xfa   : > { %v1364_v4 = vcombine.high %v333_v0, %v337_v3  ;;  %v341_v5 = vld [vmem:[%s2094_s2 + $0x80] sm:$0xff]  ;;  %1093 = vmatprep.subr.bf16.mxu0 %v1356_v1  ;;  %v1363_v8 = vcombine.low %v333_v0, %v337_v3  ;;  %v1366_v18 = vcombine.high %v334_v14, %v338_v15  ;;  %v342_v19 = vld [vmem:[%s2094_s2 + $0x88] sm:$0xff]  ;;  %1134 = vmatprep.subr.bf16.mxu1 %v1358_v12  ;;  %s1352_s10 = sshll.u32 %s312_s9, 3  ;;  %p1309_p5 = scmp.lt.s32.totalorder %s1488_s15, 8 }
  0xfb   : > { %v345_v6 = vld [vmem:[%s2094_s2 + $0xa0] sm:$0xff]  ;;  %1094 = vmatpush1.bf16.msra.mxu0 %v1355_v2  ;;  %v346_v28 = vld [vmem:[%s2094_s2 + $0xa8] sm:$0xff]  ;;  %1135 = vmatpush1.bf16.msra.mxu1 %v1357_v13  ;;  %v1365_v30 = vcombine.low %v334_v14, %v338_v15  ;;  %s314_s11 = sshra.s32 %s1352_s10, 3  ;;  %s308_s0 = sadd.s32 1, %s1569_s0  }
  0xfc   : > { %1095 = vmatprep.subr.bf16.mxu0 %v1364_v4  ;;  %v1372_v11 = vcombine.high %v341_v5, %v345_v6  ;;  %v349_v16 = vld [vmem:[%s2094_s2 + $0xc0] sm:$0xff]  ;;  %v1371_v29 = vcombine.low %v341_v5, %v345_v6  ;;  %1136 = vmatprep.subr.bf16.mxu1 %v1366_v18  ;;  %v1374_v33 = vcombine.high %v342_v19, %v346_v28  ;;  %v350_v35 = vld [vmem:[%s2094_s2 + $0xc8] sm:$0xff]  ;;  %s1491_s12 = sshll.u32 %s314_s11, 5  ;;  %p1310_p6 = pnand %p1309_p5, %p1308_p4 }
  0xfd   : > { %v353_v17 = vld [vmem:[%s2094_s2 + $0xe0] sm:$0xff]  ;;  %v354_v36 = vld [vmem:[%s2094_s2 + $0xe8] sm:$0xff]  ;;  %v1373_v38 = vcombine.low %v342_v19, %v346_v28  ;;  %s318_s13 = scalar_lea.vmem [#allocation2], %s1491_s12  ;;  %p305_p7 = scmp.ge.s32.totalorder %s308_s0, 9  }
  0xfe   : > { %v1380_v31 = vcombine.high %v349_v16, %v353_v17  ;;  %v357_v32 = vld [vmem:[%s2094_s2 + $0x100] sm:$0xff]  ;;  %v1379_v37 = vcombine.low %v349_v16, %v353_v17  ;;  %v1382_v41 = vcombine.high %v350_v35, %v354_v36  ;;  %v358_v43 = vld [vmem:[%s2094_s2 + $0x108] sm:$0xff]  ;;  %v1381_v46 = vcombine.low %v350_v35, %v354_v36  ;;  %s1485_s14 = scalar_select %p1282_p3, 0, 1 }
  0xff   : > { %1096 = vmatpush1.bf16.msra.mxu0 %v1363_v8  ;;  %v361_v34 = vld [vmem:[%s2094_s2 + $0x120] sm:$0xff]  ;;  %1137 = vmatpush1.bf16.msra.mxu1 %v1365_v30  ;;  %v362_v44 = vld [vmem:[%s2094_s2 + $0x128] sm:$0xff]  ;;  %s1489_s16 = scalar_select %p1310_p6, 0, 1 }
 0x100   : > { %1097 = vmatprep.subr.bf16.mxu0 %v1372_v11  ;;  %v1388_v39 = vcombine.high %v357_v32, %v361_v34  ;;  %v365_v40 = vld [vmem:[%s2094_s2 + $0x140] sm:$0xff]  ;;  %1138 = vmatprep.subr.bf16.mxu1 %v1374_v33  ;;  %v1387_v45 = vcombine.low %v357_v32, %v361_v34  ;;  %v1390_v49 = vcombine.high %v358_v43, %v362_v44  ;;  %v366_v51 = vld [vmem:[%s2094_s2 + $0x148] sm:$0xff] }
 0x101   : > { %v369_v42 = vld [vmem:[%s2094_s2 + $0x160] sm:$0xff]  ;;  %v370_v52 = vld [vmem:[%s2094_s2 + $0x168] sm:$0xff]  ;;  %v1389_v54 = vcombine.low %v358_v43, %v362_v44 }
 0x102   : > { %v1396_v47 = vcombine.high %v365_v40, %v369_v42  ;;  %v373_v48 = vld [vmem:[%s2094_s2 + $0x180] sm:$0xff]  ;;  %v1395_v53 = vcombine.low %v365_v40, %v369_v42  ;;  %v1398_v57 = vcombine.high %v366_v51, %v370_v52  ;;  %v374_v59 = vld [vmem:[%s2094_s2 + $0x188] sm:$0xff]  ;;  %v1397_v0 = vcombine.low %v366_v51, %v370_v52 }
 0x103   : > { %1098 = vmatpush1.bf16.msra.mxu0 %v1371_v29  ;;  %1139 = vmatpush1.bf16.msra.mxu1 %v1373_v38  ;;  %v377_v50 = vld [vmem:[%s2094_s2 + $0x1a0] sm:$0xff]  ;;  %v378_v62 = vld [vmem:[%s2094_s2 + $0x1a8] sm:$0xff] }
 0x104   : > { %1099 = vmatprep.subr.bf16.mxu0 %v1380_v31  ;;  %1140 = vmatprep.subr.bf16.mxu1 %v1382_v41  ;;  %v1404_v55 = vcombine.high %v373_v48, %v377_v50  ;;  %v381_v56 = vld [vmem:[%s2094_s2 + $0x1c0] sm:$0xff]  ;;  %v1403_v63 = vcombine.low %v373_v48, %v377_v50  ;;  %v1406_v3 = vcombine.high %v374_v59, %v378_v62  ;;  %v382_v5 = vld [vmem:[%s2094_s2 + $0x1c8] sm:$0xff] }
 0x105   : > { %v385_v58 = vld [vmem:[%s2094_s2 + $0x1e0] sm:$0xff]  ;;  %v386_v6 = vld [vmem:[%s2094_s2 + $0x1e8] sm:$0xff]  ;;  %v1405_v9 = vcombine.low %v374_v59, %v378_v62 }
 0x106   : > { %v1412_v1 = vcombine.high %v381_v56, %v385_v58  ;;  %v389_v2 = vld [vmem:[%s2094_s2 + $0x200] sm:$0xff]  ;;  %v1411_v8 = vcombine.low %v381_v56, %v385_v58  ;;  %v1414_v12 = vcombine.high %v382_v5, %v386_v6  ;;  %v390_v14 = vld [vmem:[%s2094_s2 + $0x208] sm:$0xff]  ;;  %v1413_v17 = vcombine.low %v382_v5, %v386_v6 }
 0x107   : > { %1100 = vmatpush1.bf16.msra.mxu0 %v1379_v37  ;;  %1141 = vmatpush1.bf16.msra.mxu1 %v1381_v46  ;;  %v393_v4 = vld [vmem:[%s2094_s2 + $0x220] sm:$0xff]  ;;  %v394_v15 = vld [vmem:[%s2094_s2 + $0x228] sm:$0xff] }
 0x108   : > { %1101 = vmatprep.subr.bf16.mxu0 %v1388_v39  ;;  %1142 = vmatprep.subr.bf16.mxu1 %v1390_v49  ;;  %v1420_v10 = vcombine.high %v389_v2, %v393_v4  ;;  %v397_v11 = vld [vmem:[%s2094_s2 + $0x240] sm:$0xff]  ;;  %v1419_v16 = vcombine.low %v389_v2, %v393_v4  ;;  %v1422_v28 = vcombine.high %v390_v14, %v394_v15  ;;  %v398_v30 = vld [vmem:[%s2094_s2 + $0x248] sm:$0xff] }
 0x109   : > { %v401_v13 = vld [vmem:[%s2094_s2 + $0x260] sm:$0xff]  ;;  %v402_v31 = vld [vmem:[%s2094_s2 + $0x268] sm:$0xff]  ;;  %v1421_v33 = vcombine.low %v390_v14, %v394_v15  ;;  %v327_v14 = vld [vmem:[%s2094_s2 + $0x10] sm:$0xff] }
 0x10a   : > { %v1428_v18 = vcombine.high %v397_v11, %v401_v13  ;;  %v405_v19 = vld [vmem:[%s2094_s2 + $0x280] sm:$0xff]  ;;  %v1427_v32 = vcombine.low %v397_v11, %v401_v13  ;;  %v1430_v36 = vcombine.high %v398_v30, %v402_v31  ;;  %v406_v38 = vld [vmem:[%s2094_s2 + $0x288] sm:$0xff]  ;;  %v1429_v41 = vcombine.low %v398_v30, %v402_v31  ;;  %v335_v30 = vld [vmem:[%s2094_s2 + $0x50] sm:$0xff] }
 0x10b   : > { %1102 = vmatpush1.bf16.msra.mxu0 %v1387_v45  ;;  %1143 = vmatpush1.bf16.msra.mxu1 %v1389_v54  ;;  %v409_v29 = vld [vmem:[%s2094_s2 + $0x2a0] sm:$0xff]  ;;  %v410_v39 = vld [vmem:[%s2094_s2 + $0x2a8] sm:$0xff] }
 0x10c   : > { %1103 = vmatprep.subr.bf16.mxu0 %v1396_v47  ;;  %1144 = vmatprep.subr.bf16.mxu1 %v1398_v57  ;;  %v1436_v34 = vcombine.high %v405_v19, %v409_v29  ;;  %v413_v35 = vld [vmem:[%s2094_s2 + $0x2c0] sm:$0xff]  ;;  %v1435_v40 = vcombine.low %v405_v19, %v409_v29  ;;  %v1438_v44 = vcombine.high %v406_v38, %v410_v39  ;;  %v414_v46 = vld [vmem:[%s2094_s2 + $0x2c8] sm:$0xff] }
 0x10d   : > { %v417_v37 = vld [vmem:[%s2094_s2 + $0x2e0] sm:$0xff]  ;;  %v418_v47 = vld [vmem:[%s2094_s2 + $0x2e8] sm:$0xff]  ;;  %v1437_v49 = vcombine.low %v406_v38, %v410_v39  ;;  %v343_v39 = vld [vmem:[%s2094_s2 + $0x90] sm:$0xff] }
 0x10e   : > { %v1444_v42 = vcombine.high %v413_v35, %v417_v37  ;;  %v421_v43 = vld [vmem:[%s2094_s2 + $0x300] sm:$0xff]  ;;  %v1443_v48 = vcombine.low %v413_v35, %v417_v37  ;;  %v1446_v52 = vcombine.high %v414_v46, %v418_v47  ;;  %v422_v54 = vld [vmem:[%s2094_s2 + $0x308] sm:$0xff]  ;;  %v1445_v57 = vcombine.low %v414_v46, %v418_v47  ;;  %v351_v47 = vld [vmem:[%s2094_s2 + $0xd0] sm:$0xff] }
 0x10f   : > { %1104 = vmatpush1.bf16.msra.mxu0 %v1395_v53  ;;  %1145 = vmatpush1.bf16.msra.mxu1 %v1397_v0  ;;  %v425_v45 = vld [vmem:[%s2094_s2 + $0x320] sm:$0xff]  ;;  %v430_v0 = vld [vmem:[%s2094_s2 + $0x348] sm:$0xff]  ;;  %v1881_v35 = vpack.c.bf16 %v1565_v61, %v1565_v61 }
 0x110   : > { %1105 = vmatprep.subr.bf16.mxu0 %v1404_v55  ;;  %1146 = vmatprep.subr.bf16.mxu1 %v1406_v3  ;;  %v1452_v50 = vcombine.high %v421_v43, %v425_v45  ;;  %v429_v51 = vld [vmem:[%s2094_s2 + $0x340] sm:$0xff]  ;;  %v426_v55 = vld [vmem:[%s2094_s2 + $0x328] sm:$0xff]  ;;  %v1451_v56 = vcombine.low %v421_v43, %v425_v45  ;;  %v340_v43 = vld [vmem:[%s2094_s2 + $0x78] sm:$0xff] }
 0x111   : > { %v433_v53 = vld [vmem:[%s2094_s2 + $0x360] sm:$0xff]  ;;  %v1454_v62 = vcombine.high %v422_v54, %v426_v55  ;;  %v1453_v3 = vcombine.low %v422_v54, %v426_v55  ;;  %v359_v55 = vld [vmem:[%s2094_s2 + $0x110] sm:$0xff] }
 0x112   : > { %v1460_v58 = vcombine.high %v429_v51, %v433_v53  ;;  %v437_v59 = vld [vmem:[%s2094_s2 + $0x380] sm:$0xff]  ;;  %v1459_v2 = vcombine.low %v429_v51, %v433_v53  ;;  %v348_v51 = vld [vmem:[%s2094_s2 + $0xb8] sm:$0xff] }
 0x113   : > { %1106 = vmatpush1.bf16.msra.mxu0 %v1403_v63  ;;  %1147 = vmatpush1.bf16.msra.mxu1 %v1405_v9  ;;  %v441_v63 = vld [vmem:[%s2094_s2 + $0x3a0] sm:$0xff]  ;;  %v438_v9 = vld [vmem:[%s2094_s2 + $0x388] sm:$0xff] }
 0x114   : > { %1107 = vmatprep.subr.bf16.mxu0 %v1412_v1  ;;  %1148 = vmatprep.subr.bf16.mxu1 %v1414_v12  ;;  %v434_v1 = vld [vmem:[%s2094_s2 + $0x368] sm:$0xff]  ;;  %v1468_v4 = vcombine.high %v437_v59, %v441_v63  ;;  %v445_v5 = vld [vmem:[%s2094_s2 + $0x3c0] sm:$0xff]  ;;  %v1467_v11 = vcombine.low %v437_v59, %v441_v63  ;;  %v356_v59 = vld [vmem:[%s2094_s2 + $0xf8] sm:$0xff] }
 0x115   : > { %v1462_v6 = vcombine.high %v430_v0, %v434_v1  ;;  %v1461_v12 = vcombine.low %v430_v0, %v434_v1  ;;  %v367_v1 = vld [vmem:[%s2094_s2 + $0x150] sm:$0xff] }
 0x117   : > { %1108 = vmatpush1.bf16.msra.mxu0 %v1411_v8  ;;  %1149 = vmatpush1.bf16.msra.mxu1 %v1413_v17  ;;  %v449_v8 = vld [vmem:[%s2094_s2 + $0x3e0] sm:$0xff]  ;;  %v446_v17 = vld [vmem:[%s2094_s2 + $0x3c8] sm:$0xff] }
 0x118   : > { %1109 = vmatprep.subr.bf16.mxu0 %v1420_v10  ;;  %1150 = vmatprep.subr.bf16.mxu1 %v1422_v28  ;;  %v442_v10 = vld [vmem:[%s2094_s2 + $0x3a8] sm:$0xff]  ;;  %v1476_v13 = vcombine.high %v445_v5, %v449_v8  ;;  %v1475_v19 = vcombine.low %v445_v5, %v449_v8 }
 0x119   : > { %v1470_v15 = vcombine.high %v438_v9, %v442_v10  ;;  %v1469_v28 = vcombine.low %v438_v9, %v442_v10  ;;  %v375_v9 = vld [vmem:[%s2094_s2 + $0x190] sm:$0xff] }
 0x11b   : > { %1110 = vmatpush1.bf16.msra.mxu0 %v1419_v16  ;;  %1151 = vmatpush1.bf16.msra.mxu1 %v1421_v33  ;;  %v331_v16 = vld [vmem:[%s2094_s2 + $0x30] sm:$0xff]  ;;  %v328_v33 = vld [vmem:[%s2094_s2 + $0x18] sm:$0xff] }
 0x11c   : > { %1111 = vmatprep.subr.bf16.mxu0 %v1428_v18  ;;  %1152 = vmatprep.subr.bf16.mxu1 %v1430_v36  ;;  %v450_v18 = vld [vmem:[%s2094_s2 + $0x3e8] sm:$0xff]  ;;  %v1360_v29 = vcombine.high %v327_v14, %v331_v16  ;;  %v1359_v36 = vcombine.low %v327_v14, %v331_v16 }
 0x11d   : > { %v1478_v31 = vcombine.high %v446_v17, %v450_v18  ;;  %v1477_v37 = vcombine.low %v446_v17, %v450_v18  ;;  %v383_v17 = vld [vmem:[%s2094_s2 + $0x1d0] sm:$0xff] }
 0x11f   : > { %1112 = vmatpush1.bf16.msra.mxu0 %v1427_v32  ;;  %1153 = vmatpush1.bf16.msra.mxu1 %v1429_v41  ;;  %v339_v32 = vld [vmem:[%s2094_s2 + $0x70] sm:$0xff] }
 0x120   : > { %1113 = vmatprep.subr.bf16.mxu0 %v1436_v34  ;;  %1154 = vmatprep.subr.bf16.mxu1 %v1438_v44  ;;  %v332_v34 = vld [vmem:[%s2094_s2 + $0x38] sm:$0xff]  ;;  %v1368_v38 = vcombine.high %v335_v30, %v339_v32  ;;  %v347_v41 = vld [vmem:[%s2094_s2 + $0xb0] sm:$0xff]  ;;  %v1367_v44 = vcombine.low %v335_v30, %v339_v32 }
 0x121   : > { %v1361_v45 = vcombine.low %v328_v33, %v332_v34  ;;  %v1376_v46 = vcombine.high %v343_v39, %v347_v41 }
 0x123   : > { %1114 = vmatpush1.bf16.msra.mxu0 %v1435_v40  ;;  %1155 = vmatpush1.bf16.msra.mxu1 %v1437_v49  ;;  %v1362_v40 = vcombine.high %v328_v33, %v332_v34  ;;  %v355_v49 = vld [vmem:[%s2094_s2 + $0xf0] sm:$0xff] }
 0x124   : > { %1115 = vmatprep.subr.bf16.mxu0 %v1444_v42  ;;  %1156 = vmatprep.subr.bf16.mxu1 %v1446_v52  ;;  %v336_v42 = vld [vmem:[%s2094_s2 + $0x58] sm:$0xff]  ;;  %v1375_v52 = vcombine.low %v343_v39, %v347_v41  ;;  %v1384_v54 = vcombine.high %v351_v47, %v355_v49  ;;  %v391_v33 = vld [vmem:[%s2094_s2 + $0x210] sm:$0xff] }
 0x125   : > { %v1369_v53 = vcombine.low %v336_v42, %v340_v43 }
 0x127   : > { %1116 = vmatpush1.bf16.msra.mxu0 %v1443_v48  ;;  %1157 = vmatpush1.bf16.msra.mxu1 %v1445_v57  ;;  %v1370_v48 = vcombine.high %v336_v42, %v340_v43  ;;  %v363_v57 = vld [vmem:[%s2094_s2 + $0x130] sm:$0xff] }
 0x128   : > { %1117 = vmatprep.subr.bf16.mxu0 %v1452_v50  ;;  %1158 = vmatprep.subr.bf16.mxu1 %v1454_v62  ;;  %v344_v50 = vld [vmem:[%s2094_s2 + $0x98] sm:$0xff]  ;;  %v1383_v62 = vcombine.low %v351_v47, %v355_v49  ;;  %v1392_v0 = vcombine.high %v359_v55, %v363_v57  ;;  %v1391_v5 = vcombine.low %v359_v55, %v363_v57  ;;  %v399_v42 = vld [vmem:[%s2094_s2 + $0x250] sm:$0xff] }
 0x129   : > { %v1377_v63 = vcombine.low %v344_v50, %v348_v51 }
 0x12b   : > { %1118 = vmatpush1.bf16.msra.mxu0 %v1451_v56  ;;  %1159 = vmatpush1.bf16.msra.mxu1 %v1453_v3  ;;  %v1378_v56 = vcombine.high %v344_v50, %v348_v51  ;;  %v371_v3 = vld [vmem:[%s2094_s2 + $0x170] sm:$0xff] }
 0x12c   : > { %1119 = vmatprep.subr.bf16.mxu0 %v1460_v58  ;;  %1160 = vmatprep.subr.bf16.mxu1 %v1462_v6  ;;  %v352_v58 = vld [vmem:[%s2094_s2 + $0xd8] sm:$0xff]  ;;  %v1400_v8 = vcombine.high %v367_v1, %v371_v3  ;;  %v1399_v14 = vcombine.low %v367_v1, %v371_v3  ;;  %v407_v50 = vld [vmem:[%s2094_s2 + $0x290] sm:$0xff] }
 0x12d   : > { %v1385_v6 = vcombine.low %v352_v58, %v356_v59 }
 0x12f   : > { %1120 = vmatpush1.bf16.msra.mxu0 %v1459_v2  ;;  %1161 = vmatpush1.bf16.msra.mxu1 %v1461_v12  ;;  %v1386_v2 = vcombine.high %v352_v58, %v356_v59  ;;  %v368_v12 = vld [vmem:[%s2094_s2 + $0x158] sm:$0xff]  ;;  %v415_v58 = vld [vmem:[%s2094_s2 + $0x2d0] sm:$0xff] }
 0x130   : > { %1121 = vmatprep.subr.bf16.mxu0 %v1468_v4  ;;  %1162 = vmatprep.subr.bf16.mxu1 %v1470_v15  ;;  %v364_v4 = vld [vmem:[%s2094_s2 + $0x138] sm:$0xff] }
 0x133   : > { %1122 = vmatpush1.bf16.msra.mxu0 %v1467_v11  ;;  %1163 = vmatpush1.bf16.msra.mxu1 %v1469_v28  ;;  %v379_v11 = vld [vmem:[%s2094_s2 + $0x1b0] sm:$0xff]  ;;  %v376_v28 = vld [vmem:[%s2094_s2 + $0x198] sm:$0xff] }
 0x134   : > { %1123 = vmatprep.subr.bf16.mxu0 %v1476_v13  ;;  %1164 = vmatprep.subr.bf16.mxu1 %v1478_v31  ;;  %v372_v13 = vld [vmem:[%s2094_s2 + $0x178] sm:$0xff]  ;;  %v1408_v16 = vcombine.high %v375_v9, %v379_v11  ;;  %v1407_v30 = vcombine.low %v375_v9, %v379_v11 }
 0x135   : > { %v1402_v18 = vcombine.high %v368_v12, %v372_v13  ;;  %v1401_v31 = vcombine.low %v368_v12, %v372_v13  ;;  %v431_v12 = vld [vmem:[%s2094_s2 + $0x350] sm:$0xff] }
 0x137   : > { %1124 = vmatpush1.bf16.msra.mxu0 %v1475_v19  ;;  %1165 = vmatpush1.bf16.msra.mxu1 %v1477_v37  ;;  %v387_v19 = vld [vmem:[%s2094_s2 + $0x1f0] sm:$0xff]  ;;  %v384_v37 = vld [vmem:[%s2094_s2 + $0x1d8] sm:$0xff] }
 0x138   : > { %1175 = vmatprep.subr.bf16.mxu0 %v1360_v29  ;;  %1216 = vmatprep.subr.bf16.mxu1 %v1362_v40  ;;  %v380_v29 = vld [vmem:[%s2094_s2 + $0x1b8] sm:$0xff]  ;;  %v1416_v32 = vcombine.high %v383_v17, %v387_v19  ;;  %v1415_v39 = vcombine.low %v383_v17, %v387_v19 }
 0x139   : > { %v1410_v34 = vcombine.high %v376_v28, %v380_v29  ;;  %v1409_v40 = vcombine.low %v376_v28, %v380_v29  ;;  %v439_v28 = vld [vmem:[%s2094_s2 + $0x390] sm:$0xff] }
 0x13a   : > { %1126 = vmatmul.mubr.bf16.vlgmr.msra.gmra.mrb[0].mxu0 %v1881_v35  ;;  %1167 = vmatmul.mubr.bf16.vlgmr.msra.gmra.mrb[0].mxu1 %v1881_v35 }
 0x13b   : > { %1176 = vmatpush1.bf16.msra.mxu0 %v1359_v36  ;;  %1207 = vmatprep.mubr.bf16.mxu0 %v1683_v7  ;;  %v395_v36 = vld [vmem:[%s2094_s2 + $0x230] sm:$0xff] }
 0x13c   : > { %1177 = vmatprep.subr.bf16.mxu0 %v1368_v38  ;;  %1217 = vmatpush1.bf16.msra.mxu1 %v1361_v45  ;;  %v388_v38 = vld [vmem:[%s2094_s2 + $0x1f8] sm:$0xff]  ;;  %v1424_v41 = vcombine.high %v391_v33, %v395_v36  ;;  %v1423_v47 = vcombine.low %v391_v33, %v395_v36 }
 0x13d   : > { %1218 = vmatprep.subr.bf16.mxu1 %v1370_v48  ;;  %1248 = vmatprep.mubr.bf16.mxu1 %v1683_v7  ;;  %v360_v7 = vld [vmem:[%s2094_s2 + $0x118] sm:$0xff]  ;;  %v1418_v43 = vcombine.high %v384_v37, %v388_v38  ;;  %v1417_v48 = vcombine.low %v384_v37, %v388_v38  ;;  %v447_v37 = vld [vmem:[%s2094_s2 + $0x3d0] sm:$0xff] }
 0x13e   : > { %v1394_v10 = vcombine.high %v360_v7, %v364_v4  ;;  %v1393_v15 = vcombine.low %v360_v7, %v364_v4  ;;  %v392_v45 = vld [vmem:[%s2094_s2 + $0x218] sm:$0xff]  ;;  %v423_v7 = vld [vmem:[%s2094_s2 + $0x310] sm:$0xff] }
 0x13f   : > { %1178 = vmatpush1.bf16.msra.mxu0 %v1367_v44  ;;  %v403_v44 = vld [vmem:[%s2094_s2 + $0x270] sm:$0xff] }
 0x140   : > { %1179 = vmatprep.subr.bf16.mxu0 %v1376_v46  ;;  %1219 = vmatpush1.bf16.msra.mxu1 %v1369_v53  ;;  %v396_v46 = vld [vmem:[%s2094_s2 + $0x238] sm:$0xff]  ;;  %v1432_v49 = vcombine.high %v399_v42, %v403_v44  ;;  %v1431_v55 = vcombine.low %v399_v42, %v403_v44 }
 0x141   : > { %1220 = vmatprep.subr.bf16.mxu1 %v1378_v56  ;;  %v1426_v51 = vcombine.high %v392_v45, %v396_v46  ;;  %v400_v53 = vld [vmem:[%s2094_s2 + $0x258] sm:$0xff]  ;;  %v1425_v56 = vcombine.low %v392_v45, %v396_v46 }
 0x142   : > { %v448_v46 = vld [vmem:[%s2094_s2 + $0x3d8] sm:$0xff] }
 0x143   : > { %1180 = vmatpush1.bf16.msra.mxu0 %v1375_v52  ;;  %v411_v52 = vld [vmem:[%s2094_s2 + $0x2b0] sm:$0xff] }
 0x144   : > { %1181 = vmatprep.subr.bf16.mxu0 %v1384_v54  ;;  %1221 = vmatpush1.bf16.msra.mxu1 %v1377_v63  ;;  %v404_v54 = vld [vmem:[%s2094_s2 + $0x278] sm:$0xff]  ;;  %v1440_v57 = vcombine.high %v407_v50, %v411_v52  ;;  %v1439_v1 = vcombine.low %v407_v50, %v411_v52  ;;  %v319_v52 = vld [vmem:[%s318_s13] sm:$0xff] }
 0x145   : > { %1222 = vmatprep.subr.bf16.mxu1 %v1386_v2  ;;  %v1434_v59 = vcombine.high %v400_v53, %v404_v54  ;;  %v408_v63 = vld [vmem:[%s2094_s2 + $0x298] sm:$0xff]  ;;  %v1433_v2 = vcombine.low %v400_v53, %v404_v54 }
 0x147   : > { %1182 = vmatpush1.bf16.msra.mxu0 %v1383_v62  ;;  %v419_v62 = vld [vmem:[%s2094_s2 + $0x2f0] sm:$0xff] }
 0x148   : > { %1183 = vmatprep.subr.bf16.mxu0 %v1392_v0  ;;  %1223 = vmatpush1.bf16.msra.mxu1 %v1385_v6  ;;  %v412_v0 = vld [vmem:[%s2094_s2 + $0x2b8] sm:$0xff]  ;;  %v1448_v3 = vcombine.high %v415_v58, %v419_v62  ;;  %v1447_v9 = vcombine.low %v415_v58, %v419_v62 }
 0x149   : > { %1224 = vmatprep.subr.bf16.mxu1 %v1394_v10  ;;  %v1442_v4 = vcombine.high %v408_v63, %v412_v0  ;;  %v416_v6 = vld [vmem:[%s2094_s2 + $0x2d8] sm:$0xff]  ;;  %v1441_v10 = vcombine.low %v408_v63, %v412_v0 }
 0x14b   : > { %1184 = vmatpush1.bf16.msra.mxu0 %v1391_v5  ;;  %v427_v5 = vld [vmem:[%s2094_s2 + $0x330] sm:$0xff] }
 0x14c   : > { %1185 = vmatprep.subr.bf16.mxu0 %v1400_v8  ;;  %1225 = vmatpush1.bf16.msra.mxu1 %v1393_v15  ;;  %v420_v8 = vld [vmem:[%s2094_s2 + $0x2f8] sm:$0xff]  ;;  %v1456_v11 = vcombine.high %v423_v7, %v427_v5  ;;  %v1455_v17 = vcombine.low %v423_v7, %v427_v5 }
 0x14d   : > { %1226 = vmatprep.subr.bf16.mxu1 %v1402_v18  ;;  %v1450_v13 = vcombine.high %v416_v6, %v420_v8  ;;  %v424_v15 = vld [vmem:[%s2094_s2 + $0x318] sm:$0xff]  ;;  %v1449_v18 = vcombine.low %v416_v6, %v420_v8 }
 0x14f   : > { %1186 = vmatpush1.bf16.msra.mxu0 %v1399_v14  ;;  %v435_v14 = vld [vmem:[%s2094_s2 + $0x370] sm:$0xff] }
 0x150   : > { %1187 = vmatprep.subr.bf16.mxu0 %v1408_v16  ;;  %1227 = vmatpush1.bf16.msra.mxu1 %v1401_v31  ;;  %v428_v16 = vld [vmem:[%s2094_s2 + $0x338] sm:$0xff]  ;;  %v1464_v19 = vcombine.high %v431_v12, %v435_v14  ;;  %v1463_v33 = vcombine.low %v431_v12, %v435_v14 }
 0x151   : > { %1228 = vmatprep.subr.bf16.mxu1 %v1410_v34  ;;  %v1458_v29 = vcombine.high %v424_v15, %v428_v16  ;;  %v432_v31 = vld [vmem:[%s2094_s2 + $0x358] sm:$0xff]  ;;  %v1457_v34 = vcombine.low %v424_v15, %v428_v16 }
 0x153   : > { %1188 = vmatpush1.bf16.msra.mxu0 %v1407_v30  ;;  %v443_v30 = vld [vmem:[%s2094_s2 + $0x3b0] sm:$0xff] }
 0x154   : > { %1189 = vmatprep.subr.bf16.mxu0 %v1416_v32  ;;  %1229 = vmatpush1.bf16.msra.mxu1 %v1409_v40  ;;  %v436_v32 = vld [vmem:[%s2094_s2 + $0x378] sm:$0xff]  ;;  %v1472_v36 = vcombine.high %v439_v28, %v443_v30  ;;  %v1471_v42 = vcombine.low %v439_v28, %v443_v30 }
 0x155   : > { %1230 = vmatprep.subr.bf16.mxu1 %v1418_v43  ;;  %v1466_v38 = vcombine.high %v432_v31, %v436_v32  ;;  %v440_v40 = vld [vmem:[%s2094_s2 + $0x398] sm:$0xff]  ;;  %v1465_v43 = vcombine.low %v432_v31, %v436_v32 }
 0x157   : > { %1190 = vmatpush1.bf16.msra.mxu0 %v1415_v39  ;;  %v451_v39 = vld [vmem:[%s2094_s2 + $0x3f0] sm:$0xff] }
 0x158   : > { %1191 = vmatprep.subr.bf16.mxu0 %v1424_v41  ;;  %1231 = vmatpush1.bf16.msra.mxu1 %v1417_v48  ;;  %v444_v41 = vld [vmem:[%s2094_s2 + $0x3b8] sm:$0xff]  ;;  %v1480_v44 = vcombine.high %v447_v37, %v451_v39  ;;  %v1479_v48 = vcombine.low %v447_v37, %v451_v39 }
 0x159   : > { %1232 = vmatprep.subr.bf16.mxu1 %v1426_v51  ;;  %v1474_v45 = vcombine.high %v440_v40, %v444_v41 }
 0x15b   : > { %1192 = vmatpush1.bf16.msra.mxu0 %v1423_v47  ;;  %v452_v47 = vld [vmem:[%s2094_s2 + $0x3f8] sm:$0xff] }
 0x15c   : > { %1193 = vmatprep.subr.bf16.mxu0 %v1432_v49  ;;  %1233 = vmatpush1.bf16.msra.mxu1 %v1425_v56  ;;  %v1473_v49 = vcombine.low %v440_v40, %v444_v41  ;;  %v1482_v50 = vcombine.high %v448_v46, %v452_v47  ;;  %v1481_v51 = vcombine.low %v448_v46, %v452_v47 }
 0x15d   : > { %1234 = vmatprep.subr.bf16.mxu1 %v1434_v59  ;;  %v320_v59 = vld [vmem:[%s318_s13 + $0x8] sm:$0xff] }
 0x15f   : > { %1194 = vmatpush1.bf16.msra.mxu0 %v1431_v55 }
 0x160   : > { %1195 = vmatprep.subr.bf16.mxu0 %v1440_v57  ;;  %1235 = vmatpush1.bf16.msra.mxu1 %v1433_v2 }
 0x161   : > { %1236 = vmatprep.subr.bf16.mxu1 %v1442_v4 }
 0x163   : > { %1196 = vmatpush1.bf16.msra.mxu0 %v1439_v1 }
 0x164   : > { %1197 = vmatprep.subr.bf16.mxu0 %v1448_v3  ;;  %1237 = vmatpush1.bf16.msra.mxu1 %v1441_v10 }
 0x165   : > { %1238 = vmatprep.subr.bf16.mxu1 %v1450_v13  ;;  %v321_v13 = vld [vmem:[%s318_s13 + $0x10] sm:$0xff] }
 0x167   : > { %1198 = vmatpush1.bf16.msra.mxu0 %v1447_v9  ;;  %v322_v9 = vld [vmem:[%s318_s13 + $0x18] sm:$0xff] }
 0x168   : > { %1199 = vmatprep.subr.bf16.mxu0 %v1456_v11  ;;  %1239 = vmatpush1.bf16.msra.mxu1 %v1449_v18 }
 0x169   : > { %1240 = vmatprep.subr.bf16.mxu1 %v1458_v29 }
 0x16b   : > { %1200 = vmatpush1.bf16.msra.mxu0 %v1455_v17 }
 0x16c   : > { %1201 = vmatprep.subr.bf16.mxu0 %v1464_v19  ;;  %1241 = vmatpush1.bf16.msra.mxu1 %v1457_v34  ;;  %v1285_v19 = vstv %s1485_s14 }
 0x16d   : > { %1242 = vmatprep.subr.bf16.mxu1 %v1466_v38  ;;  %vm1286_vm1 = vcmp.eq.s32.totalorder %v1285_v19, 1 }
 0x16f   : > { %1202 = vmatpush1.bf16.msra.mxu0 %v1463_v33 }
 0x170   : > { %1203 = vmatprep.subr.bf16.mxu0 %v1472_v36  ;;  %1243 = vmatpush1.bf16.msra.mxu1 %v1465_v43 }
 0x171   : > { %1244 = vmatprep.subr.bf16.mxu1 %v1474_v45 }
 0x173   : > { %1204 = vmatpush1.bf16.msra.mxu0 %v1471_v42 }
 0x174   : > { %1205 = vmatprep.subr.bf16.mxu0 %v1480_v44  ;;  %1245 = vmatpush1.bf16.msra.mxu1 %v1473_v49 }
 0x175   : > { %1246 = vmatprep.subr.bf16.mxu1 %v1482_v50 }
 0x177   : > { %1206 = vmatpush1.bf16.msra.mxu0 %v1479_v48 }
 0x178   : > { %1247 = vmatpush1.bf16.msra.mxu1 %v1481_v51 }
 0x17a   : > { %1208 = vmatmul.mubr.bf16.vlgmr.msra.gmra.mrb[4].mxu0 %v1881_v35 }
 0x17b   : > { %1249 = vmatmul.mubr.bf16.vlgmr.msra.gmra.mrb[4].mxu1 %v1881_v35 }
 0x20d   : > { %v1127_v53 = vpop.f32.mrb[0].mxu0  ;;  %v1168_v63 = vpop.f32.mrb[0].mxu1 }
 0x20e   : > { %v1128_v54 = vadd.f32 %v1127_v53, %v1632_v20  ;;  %v1129_v55 = vpop.f32.mrb[1].mxu0  ;;  %v1170_v35 = vpop.f32.mrb[1].mxu1  ;;  %v1169_v11 = vadd.f32 %v1168_v63, %v1636_v22 }
 0x20f   : > { %v1130_v56 = vadd.f32 %v1129_v55, %v1634_v21  ;;  %v1131_v57 = vpop.f32.mrb[2].mxu0  ;;  %v1172_v2 = vpop.f32.mrb[2].mxu1  ;;  %v1171_v6 = vadd.f32 %v1170_v35, %v1638_v23 }
 0x210   : > { %v1257_v58 = vadd.f32 %v1128_v54, %v319_v52  ;;  %v1132_v62 = vpop.f32.mrb[3].mxu0  ;;  %v1173_v3 = vpop.f32.mrb[3].mxu1  ;;  %v1259_v15 = vadd.f32 %v1169_v11, %v321_v13  ;;  %v1313_v57 = vstv %s1489_s16 }
 0x211   : > { %v1258_v1 = vadd.f32 %v1130_v56, %v320_v59  ;;  %v1260_v12 = vadd.f32 %v1171_v6, %v322_v9  ;;  %vm1314_vm2 = vcmp.eq.s32.totalorder %v1313_v57, 1 }
 0x212   : > { %v1483_v0 = vmul.f32 -1.442695, %v1257_v58 }
 0x213   : > { %v1484_v7 = vmul.f32 -1.442695, %v1258_v1 }
 0x214   : > { %1527 = vpow2.f32 %v1483_v0 }
 0x215   : > { %1529 = vpow2.f32 %v1484_v7 }
 0x21e   : > { %v1528_v4 = vpop.eup %1527 }
 0x21f   : > { %v1264_v5 = vadd.f32 1.0, %v1528_v4  ;;  %v1530_v8 = vpop.eup %1529 }
 0x220   : > { %v1270_v10 = vadd.f32 1.0, %v1530_v8 }
 0x221   : > { %1531 = vrcp.f32 %v1264_v5 }
 0x222   : > { %1533 = vrcp.f32 %v1270_v10 }
 0x22b   : > { %v1532_v14 = vpop.eup %1531 }
 0x22c   : > { %v1273_v16 = vmul.f32 %v1532_v14, %v1260_v12  ;;  %v1534_v18 = vpop.eup %1533 }
 0x22d   : > { %v1276_v28 = vsub.f32 1.0, %v1534_v18  ;;  %v1278_v30 = vmul.f32 %v1565_v61, %v1534_v18 }
 0x22e   : > { %v1274_v17 = vadd.f32 %v1273_v16, %v1259_v15 }
 0x230   : > { %1535 = vtanh.f32 %v1274_v17 }
 0x23a   : > { %v1536_v29 = vpop.eup %1535 }
 0x23b   : > { %v1277_v31 = vmul.f32 %v1536_v29, %v1276_v28 }
 0x23d   : > { %v1279_v32 = vadd.f32 %v1278_v30, %v1277_v31 }
 0x23f   : > { %v1287_v33 = vsel %vm1286_vm1, %v1279_v32, %v1565_v61  }
 0x240   :  { %1316 = vst [vmem:[%s2095_s4] sm:$0xff] (%p305_p7), %v1287_v33 }
 0x24d   : > { %v1209_v34 = vpop.f32.mrb[4].mxu0 }
 0x24e   : > { %v1210_v36 = vadd.f32 %v1209_v34, %v1640_v24  ;;  %v1211_v37 = vpop.f32.mrb[5].mxu0  ;;  %v1250_v42 = vpop.f32.mrb[4].mxu1 }
 0x24f   : > { %v1213_v38 = vpop.f32.mrb[6].mxu0  ;;  %v1212_v41 = vadd.f32 %v1211_v37, %v1642_v25  ;;  %v1252_v43 = vpop.f32.mrb[5].mxu1  ;;  %v1251_v52 = vadd.f32 %v1250_v42, %v1644_v26 }
 0x250   : > { %v1486_v39 = vmul.f32 -1.442695, %v1210_v36  ;;  %v1214_v40 = vpop.f32.mrb[7].mxu0  ;;  %v1254_v44 = vpop.f32.mrb[6].mxu1  ;;  %v1253_v50 = vadd.f32 %v1252_v43, %v1646_v27 }
 0x251   : > { %v1255_v45 = vpop.f32.mrb[7].mxu1  ;;  %v1487_v46 = vmul.f32 -1.442695, %v1212_v41 }
 0x252   : > { %1537 = vpow2.f32 %v1486_v39 }
 0x253   : > { %1539 = vpow2.f32 %v1487_v46 }
 0x25c   : > { %v1538_v47 = vpop.eup %1537 }
 0x25d   : > { %v1291_v48 = vadd.f32 1.0, %v1538_v47  ;;  %v1540_v61 = vpop.eup %1539 }
 0x25e   : > { %v1297_v49 = vadd.f32 1.0, %v1540_v61  ;;  %v2099_v61 = vmov %v1287_v33 }
 0x25f   : > { %1541 = vrcp.f32 %v1291_v48 }
 0x260   : > { %1543 = vrcp.f32 %v1297_v49 }
 0x269   : > { %v1542_v51 = vpop.eup %1541 }
 0x26a   : > { %v1300_v53 = vmul.f32 %v1542_v51, %v1253_v50  ;;  %v1544_v55 = vpop.eup %1543 }
 0x26b   : > { %v1303_v56 = vsub.f32 1.0, %v1544_v55  ;;  %v1305_v59 = vmul.f32 %v1561_v60, %v1544_v55 }
 0x26c   : > { %v1301_v54 = vadd.f32 %v1300_v53, %v1251_v52 }
 0x26e   : > { %1545 = vtanh.f32 %v1301_v54 }
 0x278   : > { %v1546_v58 = vpop.eup %1545  ;;  %307 = sbr.rel (!%p305_p7) target bundleno = 246 (0xf6), region = 45 }
 0x279   : > { %v1304_v62 = vmul.f32 %v1546_v58, %v1303_v56 }
 0x27b   : > { %v1306_v63 = vadd.f32 %v1305_v59, %v1304_v62 }
 0x27d   : > { %v1315_v0 = vsel %vm1314_vm2, %v1306_v63, %v1561_v60  }
 0x27e   : > { %v2098_v60 = vmov %v1315_v0  ;;  %1490 = vst [vmem:[%s2095_s4 + $0x8] sm:$0xff] (%p305_p7), %v1315_v0 }

</bundles_post_ra>
